<compile_context>
chip_gen: v5e
topology: v5e:2x2
jax: 0.10.0
libtpu: 0.0.40
codegen_flags: <defaults>
</compile_context>

<pallas_src>
import math

import jax
import jax.numpy as jnp
from jax.experimental import pallas as pl
from jax.experimental.pallas import tpu as pltpu


def _round_up(x, m):
    return (x + m - 1) // m * m


def _gemm_bias_prelu_kernel(p_ref, w_ref, b_ref, a_ref, o_ref):
    # p_ref: (TP, K_pad)       bf16 im2col patch tile (batch dim squeezed)
    # w_ref: (K_pad, Cout_pad) bf16 weights, VMEM-resident (constant index_map)
    # b_ref: (1, Cout_pad)     f32 bias
    # a_ref: (1, Cout_pad)     f32 PReLU slope
    # o_ref: (TP, Cout_pad)    output tile (bf16 for conv1, f32 for conv2)
    y = jnp.dot(p_ref[...], w_ref[...], preferred_element_type=jnp.float32)
    y = y + b_ref[...]
    o_ref[...] = jnp.where(y > 0, y, a_ref[...] * y).astype(o_ref.dtype)


def conv3x3_prelu(x_nhwc, w, b, alpha, stride, out_dtype=jnp.float32):
    """3x3 conv (padding=1, dilation=1, bias) + PReLU via im2col + Pallas GEMM.

    x_nhwc: (B, H, W, Cin) f32 or bf16
    w:      (Cout, Cin, 3, 3)  (PyTorch Conv2d layout, cross-correlation)
    b:      (Cout,)
    alpha:  (Cout,)
    """
    B, H, W, Cin = x_nhwc.shape
    Cout = w.shape[0]
    Ho = (H + 2 - 3) // stride + 1
    Wo = (W + 2 - 3) // stride + 1
    P = Ho * Wo
    K = 9 * Cin

    # --- im2col (wrapper glue, plain JAX). Cast to bf16 FIRST so the 9x
    # expanded patch tensor is materialized in bf16 (halves HBM traffic).
    x_nhwc = x_nhwc.astype(jnp.bfloat16)
    xp = jnp.pad(x_nhwc, ((0, 0), (1, 1), (1, 1), (0, 0)))
    taps = []
    for kh in range(3):
        for kw in range(3):
            sl = xp[:, kh:kh + (Ho - 1) * stride + 1:stride,
                       kw:kw + (Wo - 1) * stride + 1:stride, :]
            taps.append(sl)  # (B, Ho, Wo, Cin) bf16
    # tap-major, channel-minor -> (B, Ho*Wo, 9*Cin)
    patches = jnp.stack(taps, axis=-2).reshape(B, P, K)

    # Weights reordered to match: (kh, kw, Cin, Cout) -> (9*Cin, Cout)
    wmat = jnp.transpose(w, (2, 3, 1, 0)).reshape(K, Cout)

    # --- padding / tile sizes.  Weights stay fully VMEM-resident (no K axis);
    # lane-dense, 128-aligned K and Cout.
    K_pad = _round_up(K, 128)
    Cout_pad = _round_up(Cout, 128)
    out_bytes = jnp.dtype(out_dtype).itemsize

    def _vmem_usage(tp):
        # patch tile double-buffered (bf16) + resident weights (bf16)
        # + output tile double-buffered + bias/alpha.
        return (2 * tp * K_pad * 2
                + K_pad * Cout_pad * 2
                + 2 * tp * Cout_pad * out_bytes
                + 2 * 2 * Cout_pad * 4)

    VMEM_BUDGET = 24 * 1024 * 1024  # conservative: safe even on v7x (64 MiB)
    TP = _round_up(min(1024, _round_up(P, 16)), 16)   # bf16 packs (16,128)
    while TP > 16 and _vmem_usage(TP) > VMEM_BUDGET:
        TP = _round_up(TP // 2, 16)
    # Megacore balance (v7x: 2 TCs): make the number of parallel tiles even.
    while TP > 16 and (B * (-(-P // TP))) % 2 == 1:
        TP = _round_up(TP // 2, 16)
    P_pad = _round_up(P, TP)

    patches = jnp.pad(patches, ((0, 0), (0, P_pad - P), (0, K_pad - K)))
    wmat = jnp.pad(wmat.astype(jnp.bfloat16),
                   ((0, K_pad - K), (0, Cout_pad - Cout)))
    b2 = jnp.pad(b.astype(jnp.float32), (0, Cout_pad - Cout)).reshape(1, Cout_pad)
    a2 = jnp.pad(alpha.astype(jnp.float32), (0, Cout_pad - Cout)).reshape(1, Cout_pad)

    grid = (B, P_pad // TP)

    cost = pl.CostEstimate(
        flops=2 * B * P_pad * K_pad * Cout_pad,
        transcendentals=0,
        bytes_accessed=(B * P_pad * K_pad * 2              # bf16 patches
                        + K_pad * Cout_pad * 2             # bf16 weights (once)
                        + B * P_pad * Cout_pad * out_bytes  # output
                        + 2 * Cout_pad * 4))               # bias + alpha

    vmem_limit = int(min(max(_vmem_usage(TP) + (4 << 20), 16 << 20), 48 << 20))

    out = pl.pallas_call(
        _gemm_bias_prelu_kernel,
        out_shape=jax.ShapeDtypeStruct((B, P_pad, Cout_pad), out_dtype),
        grid=grid,
        in_specs=[
            pl.BlockSpec((pl.Squeezed(), TP, K_pad), lambda bb, pp: (bb, pp, 0)),
            pl.BlockSpec((K_pad, Cout_pad), lambda bb, pp: (0, 0)),
            pl.BlockSpec((1, Cout_pad), lambda bb, pp: (0, 0)),
            pl.BlockSpec((1, Cout_pad), lambda bb, pp: (0, 0)),
        ],
        out_specs=pl.BlockSpec((pl.Squeezed(), TP, Cout_pad),
                               lambda bb, pp: (bb, pp, 0)),
        compiler_params=pltpu.CompilerParams(
            dimension_semantics=("parallel", "parallel"),
            vmem_limit_bytes=vmem_limit),
        cost_estimate=cost,
    )(patches, wmat, b2, a2)

    out = out[:, :P, :Cout].reshape(B, Ho, Wo, Cout)
    return out


def init_conv2_params(key, in_planes, out_planes):
    """Deterministic synthetic init (PyTorch-like uniform bounds, PReLU=0.25)."""
    k1, k2, k3, k4 = jax.random.split(key, 4)
    bound1 = 1.0 / math.sqrt(in_planes * 9)
    bound2 = 1.0 / math.sqrt(out_planes * 9)
    return {
        "w1": jax.random.uniform(k1, (out_planes, in_planes, 3, 3),
                                 jnp.float32, -bound1, bound1),
        "b1": jax.random.uniform(k2, (out_planes,), jnp.float32, -bound1, bound1),
        "a1": jnp.full((out_planes,), 0.25, jnp.float32),
        "w2": jax.random.uniform(k3, (out_planes, out_planes, 3, 3),
                                 jnp.float32, -bound2, bound2),
        "b2": jax.random.uniform(k4, (out_planes,), jnp.float32, -bound2, bound2),
        "a2": jnp.full((out_planes,), 0.25, jnp.float32),
    }


def conv2_forward(x_nchw, params, stride=2):
    """Equivalent of Conv2.forward on NCHW input; returns NCHW output."""
    x = jnp.transpose(x_nchw, (0, 2, 3, 1))  # NCHW -> NHWC
    # conv1 output is immediately re-quantized to bf16 by conv2's im2col, so
    # emit bf16 directly (halves intermediate HBM writeback + re-read).
    x = conv3x3_prelu(x, params["w1"], params["b1"], params["a1"], stride,
                      out_dtype=jnp.bfloat16)
    x = conv3x3_prelu(x, params["w2"], params["b2"], params["a2"], 1,
                      out_dtype=jnp.float32)
    return jnp.transpose(x, (0, 3, 1, 2))    # NHWC -> NCHW


def _reference_conv2(x_nchw, params, stride=2):
    """Pure-JAX reference with the same bf16 quantization points as the kernel."""
    def q(v):  # quantize through bf16 (matches MXU operand dtype in the kernel)
        return v.astype(jnp.bfloat16).astype(jnp.float32)

    def block(x, w, b, a, s):
        y = jax.lax.conv_general_dilated(
            q(x), q(w), window_strides=(s, s), padding=((1, 1), (1, 1)),
            dimension_numbers=("NCHW", "OIHW", "NCHW"),
            precision=jax.lax.Precision.HIGHEST)
        y = y + b[None, :, None, None]
        return jnp.where(y > 0, y, a[None, :, None, None] * y)

    x = block(x_nchw, params["w1"], params["b1"], params["a1"], stride)
    # conv1 output is carried as bf16 in the kernel pipeline.
    x = q(x)
    x = block(x, params["w2"], params["b2"], params["a2"], 1)
    return x


if __name__ == "__main__":
    key = jax.random.PRNGKey(0)
    kx, kp = jax.random.split(key)

    B, Cin, H, W = 2, 4, 16, 16
    Cout = 8
    x = jax.random.normal(kx, (B, Cin, H, W), jnp.float32)
    params = init_conv2_params(kp, Cin, Cout)

    out = conv2_forward(x, params, stride=2)
    out = jax.block_until_ready(out)

    assert out.shape == (B, Cout, H // 2, W // 2), out.shape

    ref = jax.block_until_ready(_reference_conv2(x, params, stride=2))
    assert jnp.allclose(out, ref, atol=2e-3, rtol=2e-3), \
        float(jnp.max(jnp.abs(out - ref)))

    print("KERNEL_OK")
</pallas_src>

<mosaic_0001>
module attributes {stable_mosaic.version = 11 : i64} {
  func.func @_gemm_bias_prelu_kernel(%arg0: i32, %arg1: i32, %arg2: memref<1x64x128xbf16, #tpu.memory_space<vmem>>, %arg3: memref<128x128xbf16, #tpu.memory_space<vmem>>, %arg4: memref<1x128xf32, #tpu.memory_space<vmem>>, %arg5: memref<1x128xf32, #tpu.memory_space<vmem>>, %arg6: memref<1x64x128xbf16, #tpu.memory_space<vmem>>) attributes {dimension_semantics = [#tpu.dimension_semantics<parallel>, #tpu.dimension_semantics<parallel>], iteration_bounds = array<i64: 2, 1>, scalar_prefetch = 0 : i64, scratch_operands = 0 : i64, tpu.core_type = #tpu.core_type<tc>, window_params = [{transform_indices = @transform_0, window_bounds = array<i64: 1, 64, 128>}, {pipeline_mode = #tpu.pipeline_mode<synchronous>, transform_indices = @transform_1, window_bounds = array<i64: 128, 128>}, {pipeline_mode = #tpu.pipeline_mode<synchronous>, transform_indices = @transform_2, window_bounds = array<i64: 1, 128>}, {pipeline_mode = #tpu.pipeline_mode<synchronous>, transform_indices = @transform_3, window_bounds = array<i64: 1, 128>}, {transform_indices = @transform_4, window_bounds = array<i64: 1, 64, 128>}]} {
    %c0 = arith.constant 0 : index
    %c0_0 = arith.constant 0 : index
    %c0_1 = arith.constant 0 : index
    %0 = vector.load %arg2[%c0, %c0_0, %c0_1] : memref<1x64x128xbf16, #tpu.memory_space<vmem>>, vector<1x64x128xbf16>
    %1 = vector.shape_cast %0 : vector<1x64x128xbf16> to vector<64x128xbf16>
    %c0_2 = arith.constant 0 : index
    %c0_3 = arith.constant 0 : index
    %2 = vector.load %arg3[%c0_2, %c0_3] : memref<128x128xbf16, #tpu.memory_space<vmem>>, vector<128x128xbf16>
    %cst = arith.constant dense<0.000000e+00> : vector<64x128xf32>
    %3 = tpu.matmul %1, %2, %cst {dimension_numbers = #tpu.dot_dimension_numbers<[1], [0], [0], [1], [0, 0, 1, 1], [], []>} : vector<64x128xbf16>, vector<128x128xbf16>, vector<64x128xf32> -> vector<64x128xf32>
    %c0_4 = arith.constant 0 : index
    %c0_5 = arith.constant 0 : index
    %4 = vector.load %arg4[%c0_4, %c0_5] : memref<1x128xf32, #tpu.memory_space<vmem>>, vector<1x128xf32>
    %5 = vector.broadcast %4 : vector<1x128xf32> to vector<64x128xf32>
    %6 = arith.addf %3, %5 : vector<64x128xf32>
    %cst_6 = arith.constant 0.000000e+00 : f32
    %7 = vector.broadcast %cst_6 : f32 to vector<64x128xf32>
    %8 = arith.cmpf ogt, %6, %7 : vector<64x128xf32>
    %c0_7 = arith.constant 0 : index
    %c0_8 = arith.constant 0 : index
    %9 = vector.load %arg5[%c0_7, %c0_8] : memref<1x128xf32, #tpu.memory_space<vmem>>, vector<1x128xf32>
    %10 = vector.broadcast %9 : vector<1x128xf32> to vector<64x128xf32>
    %11 = arith.mulf %10, %6 : vector<64x128xf32>
    %12 = arith.select %8, %6, %11 : vector<64x128xi1>, vector<64x128xf32>
    %13 = arith.truncf %12 : vector<64x128xf32> to vector<64x128xbf16>
    %c0_9 = arith.constant 0 : index
    %c0_10 = arith.constant 0 : index
    %c0_11 = arith.constant 0 : index
    %14 = vector.load %arg6[%c0_9, %c0_10, %c0_11] : memref<1x64x128xbf16, #tpu.memory_space<vmem>>, vector<1x64x128xbf16>
    %15 = vector.shape_cast %14 : vector<1x64x128xbf16> to vector<64x128xbf16>
    %16 = vector.shape_cast %13 : vector<64x128xbf16> to vector<1x64x128xbf16>
    tpu.vector_store %arg6[%c0_9, %c0_10, %c0_11], %16 {strides = array<i32>} : memref<1x64x128xbf16, #tpu.memory_space<vmem>>, vector<1x64x128xbf16>,
    return
  }
  func.func @transform_0(%arg0: i32, %arg1: i32) -> (i32, i32, i32) {
    %c0_i32 = arith.constant 0 : i32
    %c0_i32_0 = arith.constant 0 : i32
    return %arg0, %arg1, %c0_i32 : i32, i32, i32
  }
  func.func @transform_1(%arg0: i32, %arg1: i32) -> (i32, i32) {
    %c0_i32 = arith.constant 0 : i32
    %c0_i32_0 = arith.constant 0 : i32
    %c0_i32_1 = arith.constant 0 : i32
    return %c0_i32, %c0_i32_0 : i32, i32
  }
  func.func @transform_2(%arg0: i32, %arg1: i32) -> (i32, i32) {
    %c0_i32 = arith.constant 0 : i32
    %c0_i32_0 = arith.constant 0 : i32
    %c0_i32_1 = arith.constant 0 : i32
    return %c0_i32, %c0_i32_0 : i32, i32
  }
  func.func @transform_3(%arg0: i32, %arg1: i32) -> (i32, i32) {
    %c0_i32 = arith.constant 0 : i32
    %c0_i32_0 = arith.constant 0 : i32
    %c0_i32_1 = arith.constant 0 : i32
    return %c0_i32, %c0_i32_0 : i32, i32
  }
  func.func @transform_4(%arg0: i32, %arg1: i32) -> (i32, i32, i32) {
    %c0_i32 = arith.constant 0 : i32
    %c0_i32_0 = arith.constant 0 : i32
    return %arg0, %arg1, %c0_i32 : i32, i32, i32
  }
}

</mosaic_0001>

<bundles_post_ra>
// kernel: tpu_custom_call.1
= control target key start
LH: loop header
LB: loop body
LE: loop exit
PB: predicated region body
PF: predicated region fallthrough
CT: control target
= control target key end

     0   :  { %s1097_s0 = inlined_call_operand.hbm [shape: bf16[2,64,128], index: 0, kind: input, shape index: {}]   ;;  %s1098_s1 = inlined_call_operand.hbm [shape: bf16[128,128], index: 1, kind: input, shape index: {}]   ;;  %s1099_s2 = inlined_call_operand.vmem [shape: f32[1,128], index: 2, kind: input, shape index: {}]   ;;  %s1100_s3 = inlined_call_operand.vmem [shape: f32[1,128], index: 3, kind: input, shape index: {}]   ;;  %s1101_s4 = inlined_call_operand.hbm [shape: bf16[2,64,128], index: 4, kind: output, shape index: {}]  }
   0x1   :  { %1105 = sst [smem:[#allocation12_spill]] %s1098_s1 }
   0x2   :  { %9 = vsyncpa [#allocation3], 0 }
   0x3   :  { %11 = vsyncpa [#allocation3 + $0x1], 0 }
   0x4   :  { %12 = vsyncpa [#allocation6], 0 }
   0x5   :  { %13 = vsyncpa [#allocation4], 0 }
   0x6   :  { %15 = vsyncpa [#allocation4 + $0x1], 0  ;;  %s926_s15 = smov 0   ;;  %s928_s16 = smov 0  }
   0x7   :  { %s930_s17 = smov 0   ;;  %s932_s18 = smov 0  }
   0x8   :  { %s934_s19 = smov 0   ;;  %s936_s20 = smov 0  }
   0x9 LB: > { %s543_s21 = sadd.s32 4294967295, %s894_s20   ;;  %s544_s22 = sadd.s32 4294967294, %s894_s20   ;;  %s894_s20 = sphi %s936_s20, %s21_s20   ;;  %s890_s19 = sphi %s934_s19, %s1122_s19   ;;  %s886_s18 = sphi %s932_s18, %s1121_s18   ;;  %s882_s17 = sphi %s930_s17, %s1120_s17   ;;  %s878_s16 = sphi %s928_s16, %s1119_s16   ;;  %s874_s15 = sphi %s926_s15, %s1118_s15  }
   0xa   : > { %p55_p0 = scmp.ne.s32.totalorder %s878_s16, %s874_s15  ;;  %p960_p1 = scmp.eq.s32.totalorder %s543_s21, 0 }
   0xb   : > { %p964_p2 = scmp.eq.s32.totalorder %s543_s21, 1  ;;  %p150_p3 = scmp.eq.s32.totalorder %s544_s22, 1 }
   0xc   : > { %p970_p4 = por %p960_p1, %p55_p0  ;;  %p545_p5 = scmp.ge.s32.totalorder %s894_s20, 1 }
   0xd   : > { %p975_p6 = por %p150_p3, %p55_p0  ;;  %p157_p7 = scmp.lt.s32.totalorder %s894_s20, 3 }
   0xe   : > { %s1110_s1 = sld [smem:[#allocation12_spill]]  ;;  %s896_s5 = smov [#allocation5]  }
   0xf   : > { %p983_p8 = pnand %p545_p5, %p157_p7  ;;  %s170_s6 = sshll.u32 %s896_s5, 4  ;;  %s171_s6 = int_to_ptr.vmem [resolvable:$true] %s170_s6 }
  0x10   : > { %p547_p11 = scmp.ge.s32.totalorder %s894_s20, 2  ;;  %s1102_s7 = smov 64  }
  0x11   : > { %p677_p9 = pneg %p983_p8  ;;  %s1103_s8 = smov 4  }
  0x12   : > { %s33_s9 = sadd.s32 1, %s890_s19  ;;  %s42_s10 = sadd.s32 1, %s882_s17 }
  0x13   : > { %p678_p10 = pnand %p677_p9, %p960_p1  ;;  %p35_p12 = scmp.ge.s32.totalorder %s33_s9, 2 }
  0x14   : > { %s168_s29 = sshll.u32 %s1110_s1, 4  ;;  %p49_p13 = scmp.ne.s32.totalorder %s882_s17, %s878_s16  ;;  %s169_s29 = int_to_ptr.hbm [resolvable:$true] %s168_s29 }
  0x15   : > { %680 = dma.hbm_to_vmem [thread:$0]  (!%p678_p10), %s169_s29, 1024, %s171_s6, [#allocation6], %s1102_s7, %s1102_s7, %s1103_s8  }
  0x16   : > { %p50_p0 = scmp.eq.s32.totalorder %s894_s20, 0  ;;  %s1124_s9 = smov (%p35_p12, %s33_s9), 0 }
  0x17   : > { %1112 = sst [smem:[#allocation11_spill]] %s1124_s9  ;;  %p1008_p5 = por %p964_p2, %p49_p13 }
  0x18   : > { %p1002_p3 = por %p50_p0, %p49_p13  ;;  %s37_s13 = ssub.s32 %s890_s19, %s1124_s9 }
  0x19   : > { %p690_p7 = scmp.lt.s32.totalorder %s894_s20, 2  ;;  %p40_p9 = scmp.eq.s32.totalorder %s37_s13, 0 }
  0x1a   : > { %s190_s14 = sand.u32 1, %s882_s17   ;;  %s608_s27 = sshll.u32 %s890_s19, 5 }
  0x1b   : > { %s548_s21 = sshll.u32 %s190_s14, 5  ;;  %s201_s5 = scalar_lea.hbm %s1097_s0, %s608_s27 }
  0x1c   : > { %s1017_s22 = scalar_select %p40_p9, %s882_s17, %s42_s10  }
  0x1d   : > { %s194_s6 = scalar_lea.vmem [#allocation2], %s548_s21  ;;  %s202_s24 = sshll.u32 %s201_s5, 4  ;;  %s203_s24 = int_to_ptr.hbm [resolvable:$true] %s202_s24 }
  0x1e   : > { %s204_s7 = sshll.u32 %s194_s6, 4  ;;  %p682_p2 = pnand %p690_p7, %p1002_p3  ;;  %s205_s7 = int_to_ptr.vmem [resolvable:$true] %s204_s7 }
  0x1f   : > { %s191_s8 = scalar_lea.sflag [#allocation3], %s190_s14  ;;  %s1115_s1 = smov 4  }
  0x20   : > { %s1116_s9 = smov 64   ;;  %216 = sbr.rel (%p983_p8) target bundleno = 225 (0xe1), region = 36 }
  0x21   : > { %684 = dma.hbm_to_vmem [thread:$0]  (!%p682_p2), %s203_s24, 512, %s205_s7, %s191_s8, %s1116_s9, %s1116_s9, %s1115_s1  }
  0x22   : > { %s1031_s10 = sand.u32 (!%p983_p8), 1, %s878_s16  }
  0x23   : > { %s552_s13 = sshll.u32 (!%p983_p8), %s1031_s10, 5  ;;  %s219_s21 = scalar_lea.sflag (!%p983_p8), [#allocation3], %s1031_s10 }
  0x24   : > { %s1037_s11 = scalar_lea.vmem (!%p983_p8), [#allocation2], %s552_s13 }
  0x25   : > { %861 = dma.done.wait (%p970_p4), %s219_s21, 512  }
  0x26   : > { %863 = vsyncadd (%p970_p4), %s219_s21, 4294966784 }
  0x27   : > { %865 = dma.done.wait (%p960_p1), [#allocation6], 1024  }
  0x28   : > { %867 = vsyncadd (%p960_p1), [#allocation6], 4294966272  ;;  %v620_v0 = vld [vmem:[#allocation5 + $0x38] sm:$0xff]  ;;  %v619_v1 = vld [vmem:[#allocation5 + $0x30] sm:$0xff]  ;;  %s621_s7 = sshll.u32 %s886_s18, 5  ;;  %s252_s27 = scalar_lea.vmem [#allocation7], %s552_s13 }
  0x29   : > { %355 = vmatpush.bf16.msra.mxu0 %v620_v0  ;;  %645 = vmatpush.bf16.msra.mxu1 %v620_v0  ;;  %v618_v2 = vld [vmem:[#allocation5 + $0x28] sm:$0xff]  ;;  %v617_v3 = vld [vmem:[#allocation5 + $0x20] sm:$0xff]  ;;  %v616_v4 = vld [vmem:[#allocation5 + $0x18] sm:$0xff]  ;;  %s442_s14 = scalar_lea.hbm %s1101_s4, %s621_s7  ;;  %s443_s18 = sshll.u32 %s252_s27, 4  ;;  %s444_s18 = int_to_ptr.vmem [resolvable:$true] %s443_s18 }
  0x2a   : > { %646 = vmatpush.bf16.msra.mxu2 %v620_v0  ;;  %647 = vmatpush.bf16.msra.mxu3 %v620_v0  ;;  %v615_v5 = vld [vmem:[#allocation5 + $0x10] sm:$0xff]  ;;  %v614_v6 = vld [vmem:[#allocation5 + $0x8] sm:$0xff]  ;;  %v613_v7 = vld [vmem:[#allocation5] sm:$0xff]  ;;  %s445_s28 = sshll.u32 %s442_s14, 4  ;;  %s429_s29 = scalar_lea.sflag [#allocation4], %s1031_s10  ;;  %s446_s28 = int_to_ptr.hbm [resolvable:$true] %s445_s28 }
  0x2b   : > { %v609_v8 = vld [vmem:[%s1037_s11] sm:$0xff]  ;;  %v610_v9 = vld [vmem:[%s1037_s11 + $0x8] sm:$0xff]  ;;  %v611_v10 = vld [vmem:[%s1037_s11 + $0x10] sm:$0xff]  ;;  %s822_s5 = sshra.s32 %s446_s28, 4  ;;  %s828_s21 = scalar_lea.hbm %s1101_s4, 64  ;;  %s823_s5 = int_to_ptr.hbm [resolvable:$true] %s822_s5 }
  0x2c   : > { %v612_v11 = vld [vmem:[%s1037_s11 + $0x18] sm:$0xff]  ;;  %v746_v14 = vld [vmem:[%s1099_s2] ss:$0 sm:$0xff]  ;;  %s824_s6 = scalar_lea.hbm %s823_s5, 32  ;;  %p829_p10 = scmp.lt.s32.totalorder %s823_s5, %s1101_s4 }
  0x2d   : > { %356 = vmatpush.bf16.msra.mxu0 %v619_v1  ;;  %648 = vmatpush.bf16.msra.mxu1 %v619_v1  ;;  %v747_v16 = vld [vmem:[%s1100_s3] ss:$0 sm:$0xff]  ;;  %p825_p1 = scmp.ne.s32.totalorder %s823_s5, %s824_s6  ;;  %p830_p12 = scmp.lt.s32.totalorder %s828_s21, %s824_s6 }
  0x2e   : > { %649 = vmatpush.bf16.msra.mxu2 %v619_v1  ;;  %650 = vmatpush.bf16.msra.mxu3 %v619_v1 }
  0x2f   : > { %p826_p4 = pnand %p825_p1, %p1008_p5  ;;  %p831_p13 = por %p830_p12, %p829_p10 }
  0x31   : > { %357 = vmatpush.bf16.msra.mxu0 %v618_v2  ;;  %651 = vmatpush.bf16.msra.mxu1 %v618_v2  ;;  %p827_p8 = pneg %p826_p4 }
  0x32   : > { %652 = vmatpush.bf16.msra.mxu2 %v618_v2  ;;  %653 = vmatpush.bf16.msra.mxu3 %v618_v2 }
  0x33   : > { %p832_p0 = pnand %p831_p13, %p827_p8 }
  0x35   : > { %358 = vmatpush.bf16.msra.mxu0 %v617_v3  ;;  %654 = vmatpush.bf16.msra.mxu1 %v617_v3 }
  0x36   : > { %655 = vmatpush.bf16.msra.mxu2 %v617_v3  ;;  %656 = vmatpush.bf16.msra.mxu3 %v617_v3 }
  0x39   : > { %359 = vmatpush.bf16.msra.mxu0 %v616_v4  ;;  %657 = vmatpush.bf16.msra.mxu1 %v616_v4 }
  0x3a   : > { %658 = vmatpush.bf16.msra.mxu2 %v616_v4  ;;  %659 = vmatpush.bf16.msra.mxu3 %v616_v4 }
  0x3d   : > { %360 = vmatpush.bf16.msra.mxu0 %v615_v5  ;;  %660 = vmatpush.bf16.msra.mxu1 %v615_v5 }
  0x3e   : > { %661 = vmatpush.bf16.msra.mxu2 %v615_v5  ;;  %662 = vmatpush.bf16.msra.mxu3 %v615_v5 }
  0x41   : > { %361 = vmatpush.bf16.msra.mxu0 %v614_v6  ;;  %663 = vmatpush.bf16.msra.mxu1 %v614_v6 }
  0x42   : > { %664 = vmatpush.bf16.msra.mxu2 %v614_v6  ;;  %665 = vmatpush.bf16.msra.mxu3 %v614_v6 }
  0x45   : > { %362 = vmatpush.bf16.msra.mxu0 %v613_v7  ;;  %666 = vmatpush.bf16.msra.mxu1 %v613_v7 }
  0x46   : > { %667 = vmatpush.bf16.msra.mxu2 %v613_v7  ;;  %668 = vmatpush.bf16.msra.mxu3 %v613_v7 }
  0x48   : > { %363 = vmatmul.bf16.vlgmr.msra.gmra.mxu0 %v609_v8  ;;  %368 = vmatmul.bf16.vlgmr.msra.gmra.mxu1 %v610_v9 }
  0x49   : > { %373 = vmatmul.bf16.vlgmr.msra.gmra.mxu2 %v611_v10  ;;  %378 = vmatmul.bf16.vlgmr.msra.gmra.mxu3 %v612_v11 }
  0xc5   : > { %v364_v12 = vpop.f32.mrf.mxu0  ;;  %v369_v13 = vpop.f32.mrf.mxu1 }
  0xc6   : > { %v365_v15 = vadd.f32 %v746_v14, %v364_v12  ;;  %v370_v17 = vadd.f32 %v746_v14, %v369_v13 }
  0xc8   : > { %v396_v22 = vmul.f32 %v747_v16, %v365_v15  ;;  %v398_v23 = vmul.f32 %v747_v16, %v370_v17  ;;  %vm384_vm0 = vcmp.gt.f32.partialorder %v365_v15, 0.0  ;;  %vm386_vm1 = vcmp.gt.f32.partialorder %v370_v17, 0.0 }
  0xca   : > { %v404_v30 = vsel %vm384_vm0, %v365_v15, %v396_v22  ;;  %v406_v31 = vsel %vm386_vm1, %v370_v17, %v398_v23 }
  0xcc   : > { %v374_v18 = vpop.f32.mrf.mxu2  ;;  %v379_v19 = vpop.f32.mrf.mxu3 }
  0xcd   : > { %v366_v20 = vpop.f32.mrf.mxu0  ;;  %v371_v21 = vpop.f32.mrf.mxu1  ;;  %v375_v28 = vadd.f32 %v746_v14, %v374_v18  ;;  %v380_v29 = vadd.f32 %v746_v14, %v379_v19 }
  0xce   : > { %v367_v24 = vadd.f32 %v746_v14, %v366_v20  ;;  %v372_v25 = vadd.f32 %v746_v14, %v371_v21 }
  0xcf   : > { %v400_v38 = vmul.f32 %v747_v16, %v375_v28  ;;  %v402_v39 = vmul.f32 %v747_v16, %v380_v29  ;;  %vm388_vm4 = vcmp.gt.f32.partialorder %v375_v28, 0.0  ;;  %vm390_vm5 = vcmp.gt.f32.partialorder %v380_v29, 0.0 }
  0xd0   : > { %vm385_vm2 = vcmp.gt.f32.partialorder %v367_v24, 0.0  ;;  %v397_v26 = vmul.f32 %v747_v16, %v367_v24  ;;  %vm387_vm3 = vcmp.gt.f32.partialorder %v372_v25, 0.0  ;;  %v399_v27 = vmul.f32 %v747_v16, %v372_v25 }
  0xd1   : > { %v408_v44 = vsel %vm388_vm4, %v375_v28, %v400_v38  ;;  %v410_v45 = vsel %vm390_vm5, %v380_v29, %v402_v39 }
  0xd2   : > { %v405_v32 = vsel %vm385_vm2, %v367_v24, %v397_v26  ;;  %v407_v33 = vsel %vm387_vm3, %v372_v25, %v399_v27 }
  0xd3   : > { %v625_v34 = vpack.c.bf16 %v405_v32, %v404_v30  ;;  %v630_v35 = vpack.c.bf16 %v407_v33, %v406_v31 }
  0xd4   : > { %v376_v36 = vpop.f32.mrf.mxu2  ;;  %v381_v37 = vpop.f32.mrf.mxu3 }
  0xd5   : > { %626 = vst [vmem:[%s252_s27] sm:$0xff] %v625_v34   ;;  %v377_v40 = vadd.f32 %v746_v14, %v376_v36  ;;  %v382_v41 = vadd.f32 %v746_v14, %v381_v37 }
  0xd6   : > { %642 = vst [vmem:[%s252_s27 + $0x8] sm:$0xff] %v630_v35  }
  0xd7   : > { %vm389_vm6 = vcmp.gt.f32.partialorder %v377_v40, 0.0  ;;  %v401_v42 = vmul.f32 %v747_v16, %v377_v40  ;;  %vm391_vm7 = vcmp.gt.f32.partialorder %v382_v41, 0.0  ;;  %v403_v43 = vmul.f32 %v747_v16, %v382_v41 }
  0xd9   : > { %v409_v46 = vsel %vm389_vm6, %v377_v40, %v401_v42  ;;  %v411_v47 = vsel %vm391_vm7, %v382_v41, %v403_v43 }
  0xda   : > { %v635_v48 = vpack.c.bf16 %v409_v46, %v408_v44  ;;  %v640_v49 = vpack.c.bf16 %v411_v47, %v410_v45 }
  0xdc   : > { %643 = vst [vmem:[%s252_s27 + $0x10] sm:$0xff] %v635_v48  }
  0xdd   : > { %644 = vst [vmem:[%s252_s27 + $0x18] sm:$0xff] %v640_v49  }
  0xde   : > { %835 = shalt.err (!%p832_p0)
}
  0xdf   : > { %s899_s10 = smov 64   ;;  %s900_s23 = smov 4  }
  0xe0   : > { %675 = dma.vmem_to_hbm [thread:$0]  (%p1008_p5), %s444_s18, 512, %s446_s28, %s429_s29, %s899_s10, %s899_s10, %s900_s23  }
  0xe1 PF: > { %s460_s25 = sand.u32 1, %s874_s15   ;;  %p686_p3 = pnand %p547_p11, %p975_p6 }
  0xe2   : > { %s461_s30 = scalar_lea.sflag [#allocation4], %s460_s25 }
  0xe3   : > { %p687_p7 = pneg %p686_p3 }
  0xe5   : > { %869 = dma.done.wait (%p687_p7), %s461_s30, 512  }
  0xe6   : > { %871 = vsyncadd (%p687_p7), %s461_s30, 4294966784  ;;  %s21_s20 = sadd.s32 1, %s894_s20   ;;  %s1117_s12 = sld [smem:[#allocation11_spill]] }
  0xe7   : > { %p18_p9 = scmp.ge.s32.totalorder %s21_s20, 4   ;;  %s1118_s15 = smov %s878_s16 }
  0xe8   : > { %s1119_s16 = smov %s882_s17  ;;  %s1120_s17 = smov %s1017_s22 }
  0xe9   : > { %s1121_s18 = smov %s890_s19  ;;  %20 = sbr.rel (!%p18_p9) target bundleno = 9 (0x9), region = 85 }
  0xec   : > { %s1122_s19 = smov %s1117_s12 }
  0xee   :  { %467 = vsyncpa [#allocation3], 1 }
  0xef   :  { %469 = vsyncpa [#allocation3 + $0x1], 1 }
  0xf0   :  { %470 = vsyncpa [#allocation6], 1 }
  0xf1   :  { %471 = vsyncpa [#allocation4], 1 }
  0xf2   :  { %473 = vsyncpa [#allocation4 + $0x1], 1 }

</bundles_post_ra>
